<compile_context>
chip_gen: v7x
topology: tpu7x:2x2x1
jax: 0.10.0
libtpu: 0.0.40
codegen_flags: <defaults>
</compile_context>

<pallas_src>
import math
import functools

import jax
import jax.numpy as jnp
from jax import lax
from jax.experimental import pallas as pl
from jax.experimental.pallas import tpu as pltpu

_MiB = 1024 * 1024


def _sublane_align(dtype):
    """Sublane alignment for the second-minor axis: 8 rows/vreg for 4-byte,
    16 for 2-byte, 32 for 1-byte dtypes."""
    return {4: 8, 2: 16, 1: 32}.get(jnp.dtype(dtype).itemsize, 8)


def _pick_tile(dim, target, align):
    """Largest multiple of `align` <= target that divides `dim`; falls back to the
    full dimension (a block spanning the whole axis is always legal)."""
    if dim <= target:
        return dim
    t = (target // align) * align
    while t >= align:
        if dim % t == 0:
            return t
        t -= align
    return dim


# ---------------------------------------------------------------------------
# Kernel 1: tiled linear layer   y = x @ W_t + b
#   x: [M, K]   W_t: [K, N] (pre-transposed nn.Linear weight)   b: [N]
# ---------------------------------------------------------------------------
def _linear_kernel(x_ref, w_ref, b_ref, o_ref, acc_ref):
    @pl.when(pl.program_id(2) == 0)
    def _():
        acc_ref[...] = jnp.zeros_like(acc_ref)

    # Plain (tm, tk) @ (tk, tn): the weight was transposed once at init, so the MXU
    # consumes it in its native (k-sublane, n-lane) orientation -- no per-step relayout.
    acc_ref[...] += jnp.dot(x_ref[...], w_ref[...],
                            preferred_element_type=jnp.float32)

    @pl.when(pl.program_id(2) == pl.num_programs(2) - 1)
    def _():
        o_ref[...] = (acc_ref[...] + b_ref[...]).astype(o_ref.dtype)


def linear(x2d, w_t, bias, *, tm_target=512, tn_target=512, tk_target=512):
    """x2d: [M, K], w_t: [K, N] (pre-transposed nn.Linear weight), bias: [N]."""
    M, K = x2d.shape
    K2, N = w_t.shape
    assert K == K2 and bias.shape == (N,)

    tm = _pick_tile(M, tm_target, _sublane_align(x2d.dtype))
    tn = _pick_tile(N, tn_target, 128)
    tk = _pick_tile(K, tk_target, 128)
    grid = (M // tm, N // tn, K // tk)
    gm, gn, gk = grid

    b2d = bias.reshape(1, N).astype(jnp.float32)

    itemsize = x2d.dtype.itemsize
    # double-buffered in/out blocks + f32 accumulator, with margin; <= 48 MiB for v7x.
    need = 2 * ((tm * tk + tk * tn + tm * tn) * itemsize + tn * 4) + tm * tn * 4
    vmem_limit = int(min(48 * _MiB, max(4 * _MiB, 2 * need)))

    cost = pl.CostEstimate(
        flops=int(2 * M * N * K),
        transcendentals=0,
        # account for grid re-reads: x re-read gn times, W re-read gm times.
        bytes_accessed=int((M * K * gn + K * N * gm + M * N) * itemsize + N * 4 * gm))

    return pl.pallas_call(
        _linear_kernel,
        out_shape=jax.ShapeDtypeStruct((M, N), x2d.dtype),
        grid_spec=pltpu.PrefetchScalarGridSpec(
            num_scalar_prefetch=0,
            grid=grid,
            in_specs=[
                pl.BlockSpec((tm, tk), lambda i, j, k: (i, k)),
                pl.BlockSpec((tk, tn), lambda i, j, k: (k, j)),
                pl.BlockSpec((1, tn), lambda i, j, k: (0, j)),
            ],
            out_specs=pl.BlockSpec((tm, tn), lambda i, j, k: (i, j)),
            scratch_shapes=[pltpu.VMEM((tm, tn), jnp.float32)],
        ),
        compiler_params=pltpu.CompilerParams(
            dimension_semantics=("parallel", "parallel", "arbitrary"),
            vmem_limit_bytes=vmem_limit),
        cost_estimate=cost,
    )(x2d, w_t, b2d)


# ---------------------------------------------------------------------------
# Kernel 2: flash-style attention over all heads + fused output projection.
#   q block (1, tq, D), k/v blocks (1, tkv, D), wo (D, D), bo (1, D) -> out (1, tq, D)
# ---------------------------------------------------------------------------
def _attn_kernel(q_ref, k_ref, v_ref, wo_ref, bo_ref, o_ref,
                 m_sc, l_sc, acc_sc, *, h, d_k, mm_dtype):
    kv = pl.program_id(2)

    @pl.when(kv == 0)
    def _():
        m_sc[...] = jnp.full_like(m_sc, -jnp.inf)
        l_sc[...] = jnp.zeros_like(l_sc)
        acc_sc[...] = jnp.zeros_like(acc_sc)

    qf = q_ref[0].astype(mm_dtype)     # (tq, D); 1/sqrt(d_k) already folded into W_q
    kf = k_ref[0].astype(mm_dtype)     # (tkv, D)
    vf = v_ref[0].astype(mm_dtype)     # (tkv, D)

    for head in range(h):              # static unroll; h is small
        lo = head * d_k
        q_h = qf[:, lo:lo + d_k]
        k_h = kf[:, lo:lo + d_k]
        v_h = vf[:, lo:lo + d_k]
        # q @ k^T without an explicit transpose of the activation tile.
        s = lax.dot_general(q_h, k_h, (((1,), (1,)), ((), ())),
                            preferred_element_type=jnp.float32)     # (tq, tkv) f32
        m_prev = m_sc[head]                                          # (tq, 1)
        m_new = jnp.maximum(m_prev, jnp.max(s, axis=-1, keepdims=True))
        alpha = jnp.exp(m_prev - m_new)
        p = jnp.exp(s - m_new)
        l_sc[head] = alpha * l_sc[head] + jnp.sum(p, axis=-1, keepdims=True)
        m_sc[head] = m_new
        pv = jnp.dot(p.astype(mm_dtype), v_h, preferred_element_type=jnp.float32)
        # Commit this head's partial context to scratch immediately -> bounded live
        # ranges (no per-head results kept alive for a final concatenate).
        acc_sc[:, lo:lo + d_k] = alpha * acc_sc[:, lo:lo + d_k] + pv

    @pl.when(kv == pl.num_programs(2) - 1)
    def _():
        for head in range(h):
            lo = head * d_k
            acc_sc[:, lo:lo + d_k] = acc_sc[:, lo:lo + d_k] * pl.reciprocal(
                l_sc[head], approx=True)
        # Fused output projection: (tq, D) @ (D, D) + b_o; single lane-dense store.
        ctx = acc_sc[...].astype(mm_dtype)
        out = jnp.dot(ctx, wo_ref[...].astype(mm_dtype),
                      preferred_element_type=jnp.float32) + bo_ref[...]
        o_ref[0] = out.astype(o_ref.dtype)


def attention_fused(q, k, v, wo_t, b_o, h, *, q_col=0, k_col=0, v_col=0,
                    tq_target=256, tkv_target=512, matmul_dtype=None):
    """Scaled-dot-product attention over all heads + fused output projection.

    The q/k/v activations live in column block `*_col` (of width D = wo_t.shape[0])
    of their arrays, so the packed self-attention [B, S, 3D] slab can be passed three
    times with col blocks (0, 1, 2) and cross-attention passes three [B, S, D] arrays
    with col block 0.  Returns [B, Sq, D] already projected through (wo_t, b_o).
    NOTE(v7x): halve tq_target/tkv_target if tuning for 64 MiB VMEM at very long S.
    """
    B, Sq, _ = q.shape
    Bk, Skv, _ = k.shape
    assert Bk == B and v.shape[:2] == (B, Skv)
    D = wo_t.shape[0]
    d_k = D // h
    if matmul_dtype is None:
        matmul_dtype = q.dtype

    sub = _sublane_align(q.dtype)
    tq = _pick_tile(Sq, tq_target, sub)
    tkv = _pick_tile(Skv, tkv_target, sub)
    grid = (B, Sq // tq, Skv // tkv)

    bo2d = b_o.reshape(1, D).astype(jnp.float32)

    itemsize = q.dtype.itemsize
    need = (2 * (2 * tq * D + 2 * tkv * D) * itemsize            # dbl-buffered blocks
            + D * D * wo_t.dtype.itemsize + D * 4                # resident weights
            + (tq * D + 2 * h * tq) * 4                          # f32 scratch
            + 4 * tq * tkv * 4)                                  # live score/prob tiles
    vmem_limit = int(min(48 * _MiB, max(8 * _MiB, 2 * need)))

    cost = pl.CostEstimate(
        flops=int(4 * B * Sq * Skv * D + 2 * B * Sq * D * D),
        transcendentals=int(B * h * Sq * Skv),
        bytes_accessed=int((B * Sq * D + 2 * B * Skv * D * (Sq // tq)
                            + B * Sq * D) * itemsize
                           + D * D * wo_t.dtype.itemsize + D * 4))

    kern = functools.partial(_attn_kernel, h=h, d_k=d_k, mm_dtype=matmul_dtype)
    return pl.pallas_call(
        kern,
        out_shape=jax.ShapeDtypeStruct((B, Sq, D), q.dtype),
        grid_spec=pltpu.PrefetchScalarGridSpec(
            num_scalar_prefetch=0,
            grid=grid,
            in_specs=[
                pl.BlockSpec((1, tq, D), lambda b, qi, ki: (b, qi, q_col)),
                pl.BlockSpec((1, tkv, D), lambda b, qi, ki: (b, ki, k_col)),
                pl.BlockSpec((1, tkv, D), lambda b, qi, ki: (b, ki, v_col)),
                pl.BlockSpec((D, D), lambda b, qi, ki: (0, 0)),
                pl.BlockSpec((1, D), lambda b, qi, ki: (0, 0)),
            ],
            out_specs=pl.BlockSpec((1, tq, D), lambda b, qi, ki: (b, qi, 0)),
            scratch_shapes=[
                pltpu.VMEM((h, tq, 1), jnp.float32),   # running max per head
                pltpu.VMEM((h, tq, 1), jnp.float32),   # running denom per head
                pltpu.VMEM((tq, D), jnp.float32),      # unnormalized context
            ],
        ),
        compiler_params=pltpu.CompilerParams(
            dimension_semantics=("parallel", "parallel", "arbitrary"),
            vmem_limit_bytes=vmem_limit),
        cost_estimate=cost,
    )(q, k, v, wo_t, bo2d)


# ---------------------------------------------------------------------------
# MultiHeadedAttention forward (mask=None path of the PyTorch module)
# ---------------------------------------------------------------------------
def prepare_params(params, h, *, param_dtype=None):
    """params: list of 4 (W [D, D] PyTorch layout, b [D]) pairs (q, k, v, out order).

    One-time work done here (not per forward): transpose every weight to [Din, Dout],
    fold the 1/sqrt(d_k) attention scale into W_q/b_q, build the fused QKV weight, and
    optionally cast weights to `param_dtype` (e.g. bfloat16 for the fast MXU path)."""
    (w_q, b_q), (w_k, b_k), (w_v, b_v), (w_o, b_o) = params
    D = w_q.shape[0]
    d_k = D // h
    scale = 1.0 / math.sqrt(d_k)

    w_q = w_q * scale          # fold the score scaling into the q projection
    b_q = b_q * scale

    def cvt(w):                # [Dout, Din] -> [Din, Dout], optional dtype cast
        w_t = w.T
        return w_t.astype(param_dtype) if param_dtype is not None else w_t

    wq_t, wk_t, wv_t, wo_t = cvt(w_q), cvt(w_k), cvt(w_v), cvt(w_o)
    return dict(
        h=h,
        wq_t=wq_t, b_q=b_q, wk_t=wk_t, b_k=b_k, wv_t=wv_t, b_v=b_v,
        wo_t=wo_t, b_o=b_o,
        w_qkv_t=jnp.concatenate([wq_t, wk_t, wv_t], axis=1),   # [D, 3D]
        b_qkv=jnp.concatenate([b_q, b_k, b_v], axis=0),        # [3D]
    )


def multi_headed_attention(prep, query, key, value, *, fuse_qkv=None,
                           matmul_dtype=None):
    """query: [B, Sq, D], key/value: [B, Skv, D].  Returns [B, Sq, D]."""
    h = prep["h"]
    B, Sq, D = query.shape
    _, Skv, _ = key.shape

    if fuse_qkv is None:
        # NOTE: object identity -- numerically equal but distinct arrays take the
        # (correct, slightly slower) cross-attention path.
        fuse_qkv = (query is key) and (key is value)

    if fuse_qkv:
        # Self-attention: one [M, 3D] matmul; attention reads q/k/v as column blocks
        # 0/1/2 of the packed result (no wrapper slicing / concat / transpose).
        qkv = linear(query.reshape(B * Sq, D), prep["w_qkv_t"], prep["b_qkv"])
        qkv = qkv.reshape(B, Sq, 3 * D)
        return attention_fused(qkv, qkv, qkv, prep["wo_t"], prep["b_o"], h,
                               q_col=0, k_col=1, v_col=2, matmul_dtype=matmul_dtype)

    # Cross-attention: distinct projections, passed as three separate kernel inputs.
    q = linear(query.reshape(B * Sq, D), prep["wq_t"], prep["b_q"]).reshape(B, Sq, D)
    k = linear(key.reshape(B * Skv, D), prep["wk_t"], prep["b_k"]).reshape(B, Skv, D)
    v = linear(value.reshape(B * Skv, D), prep["wv_t"], prep["b_v"]).reshape(B, Skv, D)
    return attention_fused(q, k, v, prep["wo_t"], prep["b_o"], h,
                           matmul_dtype=matmul_dtype)


# ---------------------------------------------------------------------------
# Pure-JAX reference (for correctness check)
# ---------------------------------------------------------------------------
def reference(params, query, key, value, h):
    B, Sq, D = query.shape
    _, Skv, _ = key.shape
    d_k = D // h

    def lin(idx, x):
        w, b = params[idx]
        return x @ w.T + b

    def split(x, S):
        return x.reshape(B, S, h, d_k).transpose(0, 2, 1, 3)

    q = split(lin(0, query), Sq)
    k = split(lin(1, key), Skv)
    v = split(lin(2, value), Skv)
    scores = jnp.einsum("bhqd,bhkd->bhqk", q, k) / math.sqrt(d_k)
    p = jax.nn.softmax(scores, axis=-1)
    x = jnp.einsum("bhqk,bhkd->bhqd", p, v)
    x = x.transpose(0, 2, 1, 3).reshape(B, Sq, D)
    return lin(3, x)


if __name__ == "__main__":
    B, S, D, H = 2, 16, 128, 4          # batch, seq, d_model, heads (d_k = 32)

    key0 = jax.random.PRNGKey(0)
    keys = jax.random.split(key0, 12)

    # Deterministic init for the 4 nn.Linear(d_model, d_model) layers.
    params = []
    for i in range(4):
        w = jax.random.normal(keys[i], (D, D), jnp.float32) * (1.0 / math.sqrt(D))
        b = jax.random.normal(keys[4 + i], (D,), jnp.float32) * 0.01
        params.append((w, b))
    prep = prepare_params(params, H)

    x = jax.random.normal(keys[8], (B, S, D), jnp.float32)
    key_in = jax.random.normal(keys[9], (B, S, D), jnp.float32)
    val_in = jax.random.normal(keys[10], (B, S, D), jnp.float32)

    # 1) Self-attention: fused QKV matmul + packed flash attention + fused out-proj.
    out_self = jax.block_until_ready(multi_headed_attention(prep, x, x, x))
    ref_self = reference(params, x, x, x, H)
    assert out_self.shape == (B, S, D)
    assert jnp.allclose(out_self, ref_self, atol=2e-2, rtol=2e-2), \
        "self-attention mismatch vs reference"

    # 2) Cross-attention: separate projections, no wrapper concat.
    out_x = jax.block_until_ready(multi_headed_attention(prep, x, key_in, val_in))
    ref_x = reference(params, x, key_in, val_in, H)
    assert jnp.allclose(out_x, ref_x, atol=2e-2, rtol=2e-2), \
        "cross-attention mismatch vs reference"

    # 3) bf16 activations + weights: exercises the bf16 MXU fast path
    #    (f32 accumulation / f32 softmax inside the kernels).
    prep_bf16 = prepare_params(params, H, param_dtype=jnp.bfloat16)
    x_bf16 = x.astype(jnp.bfloat16)
    out_bf16 = jax.block_until_ready(
        multi_headed_attention(prep_bf16, x_bf16, x_bf16, x_bf16))
    assert out_bf16.dtype == jnp.bfloat16
    assert jnp.allclose(out_bf16.astype(jnp.float32), ref_self,
                        atol=1e-1, rtol=1e-1), "bf16 path mismatch vs reference"

    print("KERNEL_OK")
</pallas_src>

<mosaic_0001>
module attributes {stable_mosaic.version = 11 : i64} {
  func.func @_linear_kernel(%arg0: i32, %arg1: i32, %arg2: i32, %arg3: memref<32x128xf32, #tpu.memory_space<vmem>>, %arg4: memref<128x384xf32, #tpu.memory_space<vmem>>, %arg5: memref<1x384xf32, #tpu.memory_space<vmem>>, %arg6: memref<32x384xf32, #tpu.memory_space<vmem>>, %arg7: memref<32x384xf32, #tpu.memory_space<vmem>>) attributes {dimension_semantics = [#tpu.dimension_semantics<parallel>, #tpu.dimension_semantics<parallel>, #tpu.dimension_semantics<arbitrary>], iteration_bounds = array<i64: 1, 1, 1>, scalar_prefetch = 0 : i64, scratch_operands = 1 : i64, tpu.core_type = #tpu.core_type<tc>, window_params = [{transform_indices = @transform_0, window_bounds = array<i64: 32, 128>}, {transform_indices = @transform_1, window_bounds = array<i64: 128, 384>}, {transform_indices = @transform_2, window_bounds = array<i64: 1, 384>}, {transform_indices = @transform_3, window_bounds = array<i64: 32, 384>}]} {
    %c0_i32 = arith.constant 0 : i32
    %0 = arith.cmpi eq, %arg2, %c0_i32 : i32
    %1 = arith.extui %0 : i1 to i32
    %c0_i32_0 = arith.constant 0 : i32
    %2 = arith.cmpi ne, %1, %c0_i32_0 : i32
    scf.if %2 {
      %cst_10 = arith.constant 0.000000e+00 : f32
      %12 = vector.broadcast %cst_10 : f32 to vector<32x384xf32>
      %c0_11 = arith.constant 0 : index
      %c0_12 = arith.constant 0 : index
      %13 = vector.load %arg7[%c0_11, %c0_12] : memref<32x384xf32, #tpu.memory_space<vmem>>, vector<32x384xf32>
      tpu.vector_store %arg7[%c0_11, %c0_12], %12 {strides = array<i32>} : memref<32x384xf32, #tpu.memory_space<vmem>>, vector<32x384xf32>,
    } else {
    }
    %c0 = arith.constant 0 : index
    %c0_1 = arith.constant 0 : index
    %3 = vector.load %arg7[%c0, %c0_1] : memref<32x384xf32, #tpu.memory_space<vmem>>, vector<32x384xf32>
    %c0_2 = arith.constant 0 : index
    %c0_3 = arith.constant 0 : index
    %4 = vector.load %arg3[%c0_2, %c0_3] : memref<32x128xf32, #tpu.memory_space<vmem>>, vector<32x128xf32>
    %c0_4 = arith.constant 0 : index
    %c0_5 = arith.constant 0 : index
    %5 = vector.load %arg4[%c0_4, %c0_5] : memref<128x384xf32, #tpu.memory_space<vmem>>, vector<128x384xf32>
    %cst = arith.constant dense<0.000000e+00> : vector<32x384xf32>
    %6 = tpu.matmul %4, %5, %cst {dimension_numbers = #tpu.dot_dimension_numbers<[1], [0], [0], [1], [0, 0, 1, 1], [], []>} : vector<32x128xf32>, vector<128x384xf32>, vector<32x384xf32> -> vector<32x384xf32>
    %7 = arith.addf %3, %6 : vector<32x384xf32>
    %c0_6 = arith.constant 0 : index
    %c0_7 = arith.constant 0 : index
    %8 = vector.load %arg7[%c0_6, %c0_7] : memref<32x384xf32, #tpu.memory_space<vmem>>, vector<32x384xf32>
    tpu.vector_store %arg7[%c0_6, %c0_7], %7 {strides = array<i32>} : memref<32x384xf32, #tpu.memory_space<vmem>>, vector<32x384xf32>,
    %c0_i32_8 = arith.constant 0 : i32
    %9 = arith.cmpi eq, %arg2, %c0_i32_8 : i32
    %10 = arith.extui %9 : i1 to i32
    %c0_i32_9 = arith.constant 0 : i32
    %11 = arith.cmpi ne, %10, %c0_i32_9 : i32
    scf.if %11 {
      %c0_10 = arith.constant 0 : index
      %c0_11 = arith.constant 0 : index
      %12 = vector.load %arg7[%c0_10, %c0_11] : memref<32x384xf32, #tpu.memory_space<vmem>>, vector<32x384xf32>
      %c0_12 = arith.constant 0 : index
      %c0_13 = arith.constant 0 : index
      %13 = vector.load %arg5[%c0_12, %c0_13] : memref<1x384xf32, #tpu.memory_space<vmem>>, vector<1x384xf32>
      %14 = vector.broadcast %13 : vector<1x384xf32> to vector<32x384xf32>
      %15 = arith.addf %12, %14 : vector<32x384xf32>
      %c0_14 = arith.constant 0 : index
      %c0_15 = arith.constant 0 : index
      %16 = vector.load %arg6[%c0_14, %c0_15] : memref<32x384xf32, #tpu.memory_space<vmem>>, vector<32x384xf32>
      tpu.vector_store %arg6[%c0_14, %c0_15], %15 {strides = array<i32>} : memref<32x384xf32, #tpu.memory_space<vmem>>, vector<32x384xf32>,
    } else {
    }
    return
  }
  func.func @transform_0(%arg0: i32, %arg1: i32, %arg2: i32) -> (i32, i32) {
    %c0_i32 = arith.constant 0 : i32
    return %arg0, %arg2 : i32, i32
  }
  func.func @transform_1(%arg0: i32, %arg1: i32, %arg2: i32) -> (i32, i32) {
    %c0_i32 = arith.constant 0 : i32
    return %arg2, %arg1 : i32, i32
  }
  func.func @transform_2(%arg0: i32, %arg1: i32, %arg2: i32) -> (i32, i32) {
    %c0_i32 = arith.constant 0 : i32
    %c0_i32_0 = arith.constant 0 : i32
    return %c0_i32, %arg1 : i32, i32
  }
  func.func @transform_3(%arg0: i32, %arg1: i32, %arg2: i32) -> (i32, i32) {
    %c0_i32 = arith.constant 0 : i32
    return %arg0, %arg1 : i32, i32
  }
}

</mosaic_0001>

<bundles_post_ra>
// kernel: tpu_custom_call.1
= control target key start
LH: loop header
LB: loop body
LE: loop exit
PB: predicated region body
PF: predicated region fallthrough
CT: control target
= control target key end

     0   :  { %8 = vsyncpa [#allocation4], 0  ;;  %s674_s0 = inlined_call_operand.hbm [shape: f32[32,128], index: 0, kind: input, shape index: {}]   ;;  %s675_s1 = inlined_call_operand.hbm [shape: f32[128,384], index: 1, kind: input, shape index: {}]   ;;  %s676_s2 = inlined_call_operand.vmem [shape: f32[1,384], index: 2, kind: input, shape index: {}]   ;;  %s677_s3 = inlined_call_operand.hbm [shape: f32[32,384], index: 3, kind: output, shape index: {}]  }
   0x1   :  { %9 = vsyncpa [#allocation7], 0 }
   0x2   :  { %10 = vsyncpa [#allocation5], 0  ;;  %s597_s12 = smov [#allocation3]   ;;  %s525_s16 = scalar_lea.hbm %s674_s0, 512 }
   0x3   :  { %s16_s13 = sshll.u32 %s597_s12, 4  ;;  %p526_p0 = scmp.ne.s32.totalorder %s674_s0, %s525_s16  ;;  %s17_s13 = int_to_ptr.vmem [resolvable:$true] %s16_s13 }
   0x4   :  { %p529_p1 = scmp.lt.u32.totalorder %s525_s16, %s674_s0 }
   0x6   :  { %p531_p2 = pnand %p529_p1, %p526_p0 }
   0x8   :  { %534 = shalt.err (!%p531_p2)
}
   0x9   :  { %s535_s21 = scalar_lea.vmem %s17_s13, 512  ;;  %p540_p4 = scmp.lt.s32.totalorder %s17_s13, %s17_s13 }
   0xa   :  { %p536_p3 = scmp.ne.s32.totalorder %s17_s13, %s535_s21  ;;  %p541_p5 = scmp.lt.s32.totalorder %s535_s21, %s535_s21 }
   0xc   :  { %p542_p6 = por %p541_p5, %p540_p4 }
   0xe   :  { %p543_p7 = pnand %p542_p6, %p536_p3 }
  0x10   :  { %546 = shalt.err (!%p543_p7)
}
  0x11   :  { %s598_s22 = smov 128   ;;  %s599_s23 = smov 8  }
  0x12   :  { %22 = dma.hbm_to_vmem [thread:$0]  %s674_s0, 512, %s17_s13, [#allocation4], %s598_s22, %s598_s22, %s599_s23  }
  0x13   :  { %s600_s26 = smov [#allocation6]   ;;  %s547_s30 = scalar_lea.hbm %s675_s1, 6144 }
  0x14   :  { %s28_s27 = sshll.u32 %s600_s26, 4  ;;  %p548_p8 = scmp.ne.s32.totalorder %s675_s1, %s547_s30  ;;  %s29_s27 = int_to_ptr.vmem [resolvable:$true] %s28_s27 }
  0x15   :  { %p551_p9 = scmp.lt.u32.totalorder %s547_s30, %s675_s1 }
  0x17   :  { %p553_p10 = pnand %p551_p9, %p548_p8 }
  0x19   :  { %556 = shalt.err (!%p553_p10)
}
  0x1a   :  { %s557_s8 = scalar_lea.vmem %s29_s27, 6144  ;;  %p562_p12 = scmp.lt.s32.totalorder %s29_s27, %s29_s27 }
  0x1b   :  { %p558_p11 = scmp.ne.s32.totalorder %s29_s27, %s557_s8  ;;  %p563_p13 = scmp.lt.s32.totalorder %s557_s8, %s557_s8 }
  0x1d   :  { %p564_p0 = por %p563_p13, %p562_p12 }
  0x1f   :  { %p565_p1 = pnand %p564_p0, %p558_p11 }
  0x21   :  { %568 = shalt.err (!%p565_p1)
}
  0x22   :  { %s601_s0 = smov 384   ;;  %s602_s9 = smov 24  }
  0x23   :  { %34 = dma.hbm_to_vmem [thread:$0]  %s675_s1, 6144, %s29_s27, [#allocation7], %s601_s0, %s601_s0, %s602_s9  }
  0x24   :  { %591 = dma.done.wait [#allocation4], 512  }
  0x25   :  { %592 = vsyncadd [#allocation4], 4294966784 }
  0x26   :  { %593 = dma.done.wait [#allocation7], 6144  }
  0x27   :  { %594 = vsyncadd [#allocation7], 4294961152  ;;  %v603_v0 = vmov 0.0   ;;  %v76_v1 = vld [vmem:[#allocation6 + $0x8] sm:$0xff]  ;;  %v79_v2 = vld [vmem:[#allocation6 + $0x20] sm:$0xff] }
  0x28   :  { %187 = vmatprep.mubr.f32.mxu0 %v603_v0  ;;  %v75_v3 = vld [vmem:[#allocation6] sm:$0xff]  ;;  %v453_v4 = vpack.c.bf16 %v79_v2, %v76_v1  ;;  %v78_v5 = vld [vmem:[#allocation6 + $0x18] sm:$0xff]  ;;  %v85_v7 = vld [vmem:[#allocation6 + $0x50] sm:$0xff] }
  0x29   :  { %v82_v6 = vld [vmem:[#allocation6 + $0x38] sm:$0xff]  ;;  %v455_v8 = vpack.c.bf16 %v78_v5, %v75_v3  ;;  %v81_v10 = vld [vmem:[#allocation6 + $0x30] sm:$0xff]  ;;  %v84_v11 = vld [vmem:[#allocation6 + $0x48] sm:$0xff] }
  0x2a   :  { %v457_v9 = vpack.c.bf16 %v85_v7, %v82_v6  ;;  %v77_v12 = vld [vmem:[#allocation6 + $0x10] sm:$0xff]  ;;  %454 = vmatprep.subr.bf16.mxu0 %v453_v4  ;;  %v80_v13 = vld [vmem:[#allocation6 + $0x28] sm:$0xff]  ;;  %v91_v15 = vld [vmem:[#allocation6 + $0x80] sm:$0xff]  ;;  %v459_v16 = vpack.c.bf16 %v84_v11, %v81_v10 }
  0x2b   :  { %v88_v14 = vld [vmem:[#allocation6 + $0x68] sm:$0xff]  ;;  %456 = vmatpush1.bf16.msra.mxu0 %v455_v8  ;;  %v485_v17 = vpack.c.bf16 %v80_v13, %v77_v12  ;;  %v83_v18 = vld [vmem:[#allocation6 + $0x40] sm:$0xff]  ;;  %v90_v21 = vld [vmem:[#allocation6 + $0x78] sm:$0xff] }
  0x2c   :  { %458 = vmatprep.subr.bf16.mxu0 %v457_v9  ;;  %v461_v19 = vpack.c.bf16 %v91_v15, %v88_v14  ;;  %v87_v20 = vld [vmem:[#allocation6 + $0x60] sm:$0xff]  ;;  %v86_v22 = vld [vmem:[#allocation6 + $0x58] sm:$0xff]  ;;  %v97_v25 = vld [vmem:[#allocation6 + $0xb0] sm:$0xff]  ;;  %v338_v14 = vlaneseq }
  0x2d   :  { %486 = vmatprep.subr.bf16.mxu1 %v485_v17  ;;  %v489_v23 = vpack.c.bf16 %v86_v22, %v83_v18  ;;  %v94_v24 = vld [vmem:[#allocation6 + $0x98] sm:$0xff]  ;;  %v89_v26 = vld [vmem:[#allocation6 + $0x70] sm:$0xff]  ;;  %v92_v27 = vld [vmem:[#allocation6 + $0x88] sm:$0xff]  ;;  %v463_v28 = vpack.c.bf16 %v90_v21, %v87_v20 }
  0x2e   :  { %488 = vmatpush3.bf16.msra.mxu1 %v485_v17  ;;  %v93_v29 = vld [vmem:[#allocation6 + $0x90] sm:$0xff]  ;;  %v493_v30 = vpack.c.bf16 %v92_v27, %v89_v26  ;;  %v465_v31 = vpack.c.bf16 %v97_v25, %v94_v24  ;;  %v96_v32 = vld [vmem:[#allocation6 + $0xa8] sm:$0xff]  ;;  %v95_v33 = vld [vmem:[#allocation6 + $0xa0] sm:$0xff]  ;;  %v339_v15 = vshrl.u32 %v338_v14, 7 }
  0x2f   :  { %460 = vmatpush1.bf16.msra.mxu0 %v459_v16  ;;  %490 = vmatprep.subr.bf16.mxu1 %v489_v23  ;;  %v98_v34 = vld [vmem:[#allocation6 + $0xb8] sm:$0xff]  ;;  %v100_v35 = vld [vmem:[#allocation6 + $0xc8] sm:$0xff]  ;;  %v103_v36 = vld [vmem:[#allocation6 + $0xe0] sm:$0xff]  ;;  %v467_v37 = vpack.c.bf16 %v96_v32, %v93_v29 }
  0x30   :  { %462 = vmatprep.subr.bf16.mxu0 %v461_v19  ;;  %v99_v38 = vld [vmem:[#allocation6 + $0xc0] sm:$0xff]  ;;  %v497_v39 = vpack.c.bf16 %v98_v34, %v95_v33  ;;  %v469_v40 = vpack.c.bf16 %v103_v36, %v100_v35  ;;  %v102_v41 = vld [vmem:[#allocation6 + $0xd8] sm:$0xff]  ;;  %v101_v42 = vld [vmem:[#allocation6 + $0xd0] sm:$0xff]  ;;  %v340_v16 = vsub.s32 0, %v339_v15  ;;  %v344_v18 = vsub.s32 1, %v339_v15 }
  0x31   :  { %v104_v43 = vld [vmem:[#allocation6 + $0xe8] sm:$0xff]  ;;  %v106_v44 = vld [vmem:[#allocation6 + $0xf8] sm:$0xff]  ;;  %v109_v45 = vld [vmem:[#allocation6 + $0x110] sm:$0xff]  ;;  %v471_v46 = vpack.c.bf16 %v102_v41, %v99_v38  ;;  %v348_v19 = vsub.s32 2, %v339_v15 }
  0x32   :  { %492 = vmatpush3.bf16.msra.mxu1 %v489_v23  ;;  %v105_v47 = vld [vmem:[#allocation6 + $0xf0] sm:$0xff]  ;;  %v501_v48 = vpack.c.bf16 %v104_v43, %v101_v42  ;;  %v71_v49 = vld [vmem:[#allocation3] sm:$0xff]  ;;  %v473_v50 = vpack.c.bf16 %v109_v45, %v106_v44  ;;  %v108_v51 = vld [vmem:[#allocation6 + $0x108] sm:$0xff] }
  0x33   :  { %464 = vmatpush1.bf16.msra.mxu0 %v463_v28  ;;  %494 = vmatprep.subr.bf16.mxu1 %v493_v30  ;;  %v107_v52 = vld [vmem:[#allocation6 + $0x100] sm:$0xff]  ;;  %v110_v53 = vld [vmem:[#allocation6 + $0x118] sm:$0xff]  ;;  %v112_v54 = vld [vmem:[#allocation6 + $0x128] sm:$0xff]  ;;  %v475_v56 = vpack.c.bf16 %v108_v51, %v105_v47 }
  0x34   :  { %466 = vmatprep.subr.bf16.mxu0 %v465_v31  ;;  %447 = vmatprep.mubr.f32.mxu1 %v71_v49  ;;  %v115_v55 = vld [vmem:[#allocation6 + $0x140] sm:$0xff]  ;;  %v505_v58 = vpack.c.bf16 %v110_v53, %v107_v52  ;;  %v114_v60 = vld [vmem:[#allocation6 + $0x138] sm:$0xff]  ;;  %v113_v61 = vld [vmem:[#allocation6 + $0x130] sm:$0xff] }
  0x35   :  { %v111_v57 = vld [vmem:[#allocation6 + $0x120] sm:$0xff]  ;;  %v477_v59 = vpack.c.bf16 %v115_v55, %v112_v54  ;;  %v116_v62 = vld [vmem:[#allocation6 + $0x148] sm:$0xff]  ;;  %v118_v63 = vld [vmem:[#allocation6 + $0x158] sm:$0xff] }
  0x36   :  { %496 = vmatpush3.bf16.msra.mxu1 %v493_v30  ;;  %v121_v1 = vld [vmem:[#allocation6 + $0x170] sm:$0xff]  ;;  %v479_v2 = vpack.c.bf16 %v114_v60, %v111_v57  ;;  %v509_v4 = vpack.c.bf16 %v116_v62, %v113_v61  ;;  %v120_v6 = vld [vmem:[#allocation6 + $0x168] sm:$0xff]  ;;  %v119_v7 = vld [vmem:[#allocation6 + $0x160] sm:$0xff] }
  0x37   :  { %468 = vmatpush1.bf16.msra.mxu0 %v467_v37  ;;  %498 = vmatprep.subr.bf16.mxu1 %v497_v39  ;;  %v117_v3 = vld [vmem:[#allocation6 + $0x150] sm:$0xff]  ;;  %v481_v5 = vpack.c.bf16 %v121_v1, %v118_v63  ;;  %v122_v8 = vld [vmem:[#allocation6 + $0x178] sm:$0xff]  ;;  %v72_v11 = vld [vmem:[#allocation3 + $0x8] sm:$0xff] }
  0x38   :  { %470 = vmatprep.subr.bf16.mxu0 %v469_v40  ;;  %v483_v9 = vpack.c.bf16 %v120_v6, %v117_v3  ;;  %v513_v10 = vpack.c.bf16 %v122_v8, %v119_v7  ;;  %v73_v12 = vld [vmem:[#allocation3 + $0x10] sm:$0xff]  ;;  %v74_v13 = vld [vmem:[#allocation3 + $0x18] sm:$0xff]  ;;  %v336_v17 = vld [vmem:[%s676_s2] sm:$0x7]  ;;  %s604_s2 = smov [#allocation8]  }
  0x39   :  { %v341_v20 = vrot.slane %v336_v17, %v340_v16  ;;  %v345_v21 = vrot.slane %v336_v17, %v344_v18  ;;  %v349_v23 = vrot.slane %v336_v17, %v348_v19  ;;  %s382_s13 = sshll.u32 %s604_s2, 4  ;;  %s383_s13 = int_to_ptr.vmem [resolvable:$true] %s382_s13 }
  0x3a   :  { %500 = vmatpush3.bf16.msra.mxu1 %v497_v39  ;;  %s569_s14 = scalar_lea.vmem %s383_s13, 1536  ;;  %p574_p3 = scmp.lt.s32.totalorder %s383_s13, %s383_s13 }
  0x3b   :  { %472 = vmatpush1.bf16.msra.mxu0 %v471_v46  ;;  %502 = vmatprep.subr.bf16.mxu1 %v501_v48  ;;  %p570_p2 = scmp.ne.s32.totalorder %s383_s13, %s569_s14  ;;  %p575_p4 = scmp.lt.s32.totalorder %s569_s14, %s569_s14 }
  0x3c   :  { %474 = vmatprep.subr.bf16.mxu0 %v473_v50 }
  0x3d   :  { %p576_p5 = por %p575_p4, %p574_p3 }
  0x3e   :  { %504 = vmatpush3.bf16.msra.mxu1 %v501_v48 }
  0x3f   :  { %476 = vmatpush1.bf16.msra.mxu0 %v475_v56  ;;  %506 = vmatprep.subr.bf16.mxu1 %v505_v58  ;;  %p577_p6 = pnand %p576_p5, %p570_p2 }
  0x40   :  { %478 = vmatprep.subr.bf16.mxu0 %v477_v59 }
  0x42   :  { %508 = vmatpush3.bf16.msra.mxu1 %v505_v58 }
  0x43   :  { %480 = vmatpush1.bf16.msra.mxu0 %v479_v2  ;;  %510 = vmatprep.subr.bf16.mxu1 %v509_v4 }
  0x44   :  { %482 = vmatprep.subr.bf16.mxu0 %v481_v5 }
  0x46   :  { %512 = vmatpush3.bf16.msra.mxu1 %v509_v4 }
  0x47   :  { %484 = vmatpush1.bf16.msra.mxu0 %v483_v9  ;;  %514 = vmatprep.subr.bf16.mxu1 %v513_v10 }
  0x4a   :  { %188 = vmatmul.mubr.f32.vlgmr.msra.gmra.mrb[0].mxu0 %v71_v49  ;;  %516 = vmatpush3.bf16.msra.mxu1 %v513_v10 }
  0x4b   :  { %193 = vmatprep.mubr.f32.mxu0 %v603_v0 }
  0x4d   :  { %448 = vmatmul.mubr.f32.vlgmr.msra.gmra.mrb[0].mxu1 %v72_v11 }
  0x4e   :  { %194 = vmatmul.mubr.f32.gmra.mrb[2].mxu0 %v72_v11  ;;  %450 = vmatprep.mubr.f32.mxu1 %v73_v12 }
  0x4f   :  { %199 = vmatprep.mubr.f32.mxu0 %v603_v0 }
  0x51   :  { %451 = vmatmul.mubr.f32.gmra.mrb[2].mxu1 %v74_v13 }
  0x52   :  { %200 = vmatmul.mubr.f32.gmra.mrb[4].mxu0 %v73_v12 }
  0x53   :  { %205 = vmatprep.mubr.f32.mxu0 %v603_v0 }
  0x56   :  { %206 = vmatmul.mubr.f32.gmra.mrb[6].mxu0 %v74_v13 }
 0x11d   :  { %v189_v22 = vpop.f32.mrb[0].mxu0 }
 0x11e   :  { %v353_v24 = vadd.f32 %v341_v20, %v189_v22  ;;  %v191_v25 = vpop.f32.mrb[1].mxu0 }
 0x11f   :  { %v354_v26 = vadd.f32 %v345_v21, %v191_v25 }
 0x120   :  { %365 = vst [vmem:[#allocation8] sm:$0xff] %v353_v24  ;;  %v449_v27 = vpop.f32.mrb[0].mxu1 }
 0x121   :  { %366 = vst [vmem:[#allocation8 + $0x8] sm:$0xff] %v354_v26  ;;  %v195_v0 = vpop.f32.mrb[2].mxu0  ;;  %v358_v28 = vadd.f32 %v449_v27, %v349_v23  ;;  %v278_v29 = vpop.f32.mrb[1].mxu1 }
 0x122   :  { %v356_v30 = vadd.f32 %v341_v20, %v195_v0  ;;  %v197_v31 = vpop.f32.mrb[3].mxu0  ;;  %v355_v32 = vadd.f32 %v349_v23, %v278_v29 }
 0x123   :  { %v357_v33 = vadd.f32 %v345_v21, %v197_v31  ;;  %370 = vst [vmem:[#allocation8 + $0x28] sm:$0xff] %v358_v28 }
 0x124   :  { %368 = vst [vmem:[#allocation8 + $0x18] sm:$0xff] %v356_v30  ;;  %367 = vst [vmem:[#allocation8 + $0x10] sm:$0xff] %v355_v32  ;;  %v452_v34 = vpop.f32.mrb[2].mxu1 }
 0x125   :  { %369 = vst [vmem:[#allocation8 + $0x20] sm:$0xff] %v357_v33  ;;  %v201_v35 = vpop.f32.mrb[4].mxu0  ;;  %v364_v36 = vadd.f32 %v452_v34, %v349_v23  ;;  %v288_v37 = vpop.f32.mrb[3].mxu1 }
 0x126   :  { %v359_v38 = vadd.f32 %v341_v20, %v201_v35  ;;  %v203_v39 = vpop.f32.mrb[5].mxu0  ;;  %v361_v40 = vadd.f32 %v349_v23, %v288_v37 }
 0x127   :  { %v360_v41 = vadd.f32 %v345_v21, %v203_v39  ;;  %376 = vst [vmem:[#allocation8 + $0x58] sm:$0xff] %v364_v36 }
 0x128   :  { %371 = vst [vmem:[#allocation8 + $0x30] sm:$0xff] %v359_v38  ;;  %373 = vst [vmem:[#allocation8 + $0x40] sm:$0xff] %v361_v40 }
 0x129   :  { %372 = vst [vmem:[#allocation8 + $0x38] sm:$0xff] %v360_v41  ;;  %v207_v42 = vpop.f32.mrb[6].mxu0 }
 0x12a   :  { %v362_v43 = vadd.f32 %v341_v20, %v207_v42  ;;  %v209_v44 = vpop.f32.mrb[7].mxu0 }
 0x12b   :  { %v363_v45 = vadd.f32 %v345_v21, %v209_v44 }
 0x12c   :  { %374 = vst [vmem:[#allocation8 + $0x48] sm:$0xff] %v362_v43 }
 0x12d   :  { %375 = vst [vmem:[#allocation8 + $0x50] sm:$0xff] %v363_v45 }
 0x12e   :  { %580 = shalt.err (!%p577_p6)
}
 0x12f   :  { %s581_s17 = scalar_lea.hbm %s677_s3, 1536 }
 0x130   :  { %p582_p7 = scmp.ne.s32.totalorder %s677_s3, %s581_s17  ;;  %p585_p8 = scmp.lt.u32.totalorder %s581_s17, %s677_s3 }
 0x132   :  { %p587_p9 = pnand %p585_p8, %p582_p7 }
 0x134   :  { %590 = shalt.err (!%p587_p9)
}
 0x135   :  { %388 = dma.vmem_to_hbm [thread:$0]  %s383_s13, 1536, %s677_s3, [#allocation5], %s601_s0, %s601_s0, %s602_s9  }
 0x136   :  { %595 = dma.done.wait [#allocation5], 1536  }
 0x137   :  { %596 = vsyncadd [#allocation5], 4294965760 }
 0x138   :  { %392 = vsyncpa [#allocation4], 1 }
 0x139   :  { %393 = vsyncpa [#allocation7], 1 }
 0x13a   :  { %394 = vsyncpa [#allocation5], 1 }

</bundles_post_ra>
